<compile_context>
chip_gen: v7x
topology: tpu7x:2x2x1
jax: 0.10.0
libtpu: 0.0.40
codegen_flags: <defaults>
</compile_context>

<pallas_src>
import functools

import jax
import jax.numpy as jnp
from jax import lax
from jax.experimental import pallas as pl
from jax.experimental.pallas import tpu as pltpu


def _pooler_kernel(h_ref, w_ref, b_ref, o_ref, *, row):
    # h_ref: [B, SB, H]  slab containing the selected token (row = static idx)
    # w_ref: [TN, H]     slice of the PyTorch [out, in] weight (NOT transposed)
    # b_ref: [1, TN]     bias slice
    # o_ref: [B, TN]
    x = h_ref[:, row, :]                                  # [B, H] selected token
    y = lax.dot_general(
        x, w_ref[...],
        dimension_numbers=(((1,), (1,)), ((), ())),       # contract in_features
        preferred_element_type=jnp.float32)               # == x @ W.T on the MXU
    y = y + b_ref[...].astype(jnp.float32)
    o_ref[...] = jnp.tanh(y).astype(o_ref.dtype)


def _pick_tn(H, itemsize, budget_bytes=12 << 20, min_steps=2):
    """Output-tile width TN over the weight's `out` dimension.

    Largest multiple of 128 that divides H, keeps the double-buffered (TN, H)
    weight tile within `budget_bytes` (fits the default scoped VMEM on
    v5e/v6e/v7x), and leaves at least `min_steps` grid steps so DMA/compute
    overlap and the v7x megacore split have work to schedule.  Falls back to
    the full H when H is not a multiple of 128 (full-dim block exemption).
    """
    if H % 128 != 0:
        return H
    cap = (budget_bytes // (2 * H * itemsize)) // 128 * 128
    cap = max(cap, 128)
    if H >= min_steps * 128:
        cap = min(cap, H // min_steps)
    tn = max(min(H, cap) // 128 * 128, 128)
    while H % tn != 0:
        tn -= 128
    return tn


def pooler_forward(hidden_states, weight, bias, index=0):
    """Pooler forward: tanh(hidden_states[:, index] @ weight.T + bias).

    hidden_states: [B, S, H]; weight: [H, H] in PyTorch [out, in] layout
    (any float dtype, e.g. bf16 for bandwidth); bias: [H].
    Returns [B, H] in hidden_states.dtype.
    """
    B, S, H = hidden_states.shape
    assert weight.shape == (H, H) and bias.shape == (H,)
    assert 0 <= index < S, f"index {index} out of range for seq len {S}"

    tn = _pick_tn(H, jnp.dtype(weight.dtype).itemsize)
    grid = (H // tn,)

    # Seq block: 8 rows (sublane multiple) or the full S when S < 8, so the
    # second-to-minor block dim is layout-legal.  The selected token lives at
    # static offset `row` inside block `seq_block`.
    sb = 8 if S >= 8 else S
    seq_block = index // sb
    row = index % sb

    bias2d = bias.reshape(1, H)   # keep bias 2-D (lane-major) for VMEM

    return pl.pallas_call(
        functools.partial(_pooler_kernel, row=row),
        out_shape=jax.ShapeDtypeStruct((B, H), hidden_states.dtype),
        grid_spec=pltpu.PrefetchScalarGridSpec(
            num_scalar_prefetch=0,
            grid=grid,
            in_specs=[
                # Token select fused into the input DMA: an 8-row seq block
                # containing `index`.  Same block index every grid step, so
                # the slab is fetched from HBM exactly once per core.
                pl.BlockSpec((B, sb, H), lambda j: (0, seq_block, 0)),
                # Weight stays [out, in]; stream TN output rows per grid step
                # with the full K=H in-block (weight read from HBM once).
                pl.BlockSpec((tn, H), lambda j: (j, 0)),
                pl.BlockSpec((1, tn), lambda j: (0, j)),
            ],
            out_specs=pl.BlockSpec((B, tn), lambda j: (0, j)),
        ),
        compiler_params=pltpu.CompilerParams(
            # Output-column tiles are independent: lets the v7x megacore split
            # the grid across its two TensorCores; harmless elsewhere.
            dimension_semantics=("parallel",)),
    )(hidden_states, weight, bias2d)


if __name__ == "__main__":
    key = jax.random.PRNGKey(0)
    k_h, k_w, k_b = jax.random.split(key, 3)

    B, S, H = 2, 8, 32
    index = 3   # non-zero index exercises the fused token select

    hidden_states = jax.random.normal(k_h, (B, S, H), dtype=jnp.float32)
    # Deterministic synthetic params (shapes from nn.Linear(hidden_size, hidden_size)).
    weight = jax.random.normal(k_w, (H, H), dtype=jnp.float32) * 0.02
    bias = jax.random.normal(k_b, (H,), dtype=jnp.float32) * 0.02

    out = pooler_forward(hidden_states, weight, bias, index=index)
    out = jax.block_until_ready(out)

    # Reference check in plain JAX (same semantics as the PyTorch module).
    ref = jnp.tanh(hidden_states[:, index, :] @ weight.T + bias)
    assert out.shape == (B, H)
    assert jnp.allclose(out, ref, atol=1e-5, rtol=1e-5), \
        float(jnp.max(jnp.abs(out - ref)))

    print("KERNEL_OK")
</pallas_src>

<mosaic_0001>
module attributes {stable_mosaic.version = 11 : i64} {
  func.func @_pooler_kernel(%arg0: i32, %arg1: memref<2x8x32xf32, #tpu.memory_space<vmem>>, %arg2: memref<32x32xf32, #tpu.memory_space<vmem>>, %arg3: memref<1x32xf32, #tpu.memory_space<vmem>>, %arg4: memref<2x32xf32, #tpu.memory_space<vmem>>) attributes {dimension_semantics = [#tpu.dimension_semantics<parallel>], iteration_bounds = array<i64: 1>, scalar_prefetch = 0 : i64, scratch_operands = 0 : i64, tpu.core_type = #tpu.core_type<tc>, window_params = [{pipeline_mode = #tpu.pipeline_mode<synchronous>, transform_indices = @transform_0, window_bounds = array<i64: 2, 8, 32>}, {transform_indices = @transform_1, window_bounds = array<i64: 32, 32>}, {transform_indices = @transform_2, window_bounds = array<i64: 1, 32>}, {transform_indices = @transform_3, window_bounds = array<i64: 2, 32>}]} {
    %c0 = arith.constant 0 : index
    %c3 = arith.constant 3 : index
    %c0_0 = arith.constant 0 : index
    %0 = vector.load %arg1[%c0, %c3, %c0_0] : memref<2x8x32xf32, #tpu.memory_space<vmem>>, vector<2x1x32xf32>
    %1 = vector.shape_cast %0 : vector<2x1x32xf32> to vector<2x32xf32>
    %c0_1 = arith.constant 0 : index
    %c0_2 = arith.constant 0 : index
    %2 = vector.load %arg2[%c0_1, %c0_2] : memref<32x32xf32, #tpu.memory_space<vmem>>, vector<32x32xf32>
    %cst = arith.constant dense<0.000000e+00> : vector<2x32xf32>
    %3 = tpu.matmul %1, %2, %cst {dimension_numbers = #tpu.dot_dimension_numbers<[1], [1], [0], [0], [0, 0, 1, 0], [], []>} : vector<2x32xf32>, vector<32x32xf32>, vector<2x32xf32> -> vector<2x32xf32>
    %c0_3 = arith.constant 0 : index
    %c0_4 = arith.constant 0 : index
    %4 = vector.load %arg3[%c0_3, %c0_4] : memref<1x32xf32, #tpu.memory_space<vmem>>, vector<1x32xf32>
    %5 = vector.broadcast %4 : vector<1x32xf32> to vector<2x32xf32>
    %6 = arith.addf %3, %5 : vector<2x32xf32>
    %7 = math.tanh %6 : vector<2x32xf32>
    %c0_5 = arith.constant 0 : index
    %c0_6 = arith.constant 0 : index
    %8 = vector.load %arg4[%c0_5, %c0_6] : memref<2x32xf32, #tpu.memory_space<vmem>>, vector<2x32xf32>
    tpu.vector_store %arg4[%c0_5, %c0_6], %7 {strides = array<i32>} : memref<2x32xf32, #tpu.memory_space<vmem>>, vector<2x32xf32>,
    return
  }
  func.func @transform_0(%arg0: i32) -> (i32, i32, i32) {
    %c0_i32 = arith.constant 0 : i32
    %c0_i32_0 = arith.constant 0 : i32
    %c0_i32_1 = arith.constant 0 : i32
    %c0_i32_2 = arith.constant 0 : i32
    return %c0_i32, %c0_i32_0, %c0_i32_1 : i32, i32, i32
  }
  func.func @transform_1(%arg0: i32) -> (i32, i32) {
    %c0_i32 = arith.constant 0 : i32
    %c0_i32_0 = arith.constant 0 : i32
    return %arg0, %c0_i32 : i32, i32
  }
  func.func @transform_2(%arg0: i32) -> (i32, i32) {
    %c0_i32 = arith.constant 0 : i32
    %c0_i32_0 = arith.constant 0 : i32
    return %c0_i32, %arg0 : i32, i32
  }
  func.func @transform_3(%arg0: i32) -> (i32, i32) {
    %c0_i32 = arith.constant 0 : i32
    %c0_i32_0 = arith.constant 0 : i32
    return %c0_i32, %arg0 : i32, i32
  }
}

</mosaic_0001>

<bundles_post_ra>
// kernel: tpu_custom_call.1
= control target key start
LH: loop header
LB: loop body
LE: loop exit
PB: predicated region body
PF: predicated region fallthrough
CT: control target
= control target key end

     0   :  { %8 = vsyncpa [#allocation3], 0  ;;  %s347_s0 = inlined_call_operand.hbm [shape: f32[2,8,32], index: 0, kind: input, shape index: {}]   ;;  %s348_s1 = inlined_call_operand.hbm [shape: f32[32,32], index: 1, kind: input, shape index: {}]   ;;  %s349_s2 = inlined_call_operand.vmem [shape: f32[1,32], index: 2, kind: input, shape index: {}]   ;;  %s350_s3 = inlined_call_operand.hbm [shape: f32[2,32], index: 3, kind: output, shape index: {}]  }
   0x1   :  { %9 = vsyncpa [#allocation6], 0 }
   0x2   :  { %10 = vsyncpa [#allocation4], 0  ;;  %s277_s12 = smov [#allocation2]   ;;  %s205_s16 = scalar_lea.hbm %s347_s0, 256 }
   0x3   :  { %s16_s13 = sshll.u32 %s277_s12, 4  ;;  %p206_p0 = scmp.ne.s32.totalorder %s347_s0, %s205_s16  ;;  %s17_s13 = int_to_ptr.vmem [resolvable:$true] %s16_s13 }
   0x4   :  { %p209_p1 = scmp.lt.u32.totalorder %s205_s16, %s347_s0 }
   0x6   :  { %p211_p2 = pnand %p209_p1, %p206_p0 }
   0x8   :  { %214 = shalt.err (!%p211_p2)
}
   0x9   :  { %s215_s21 = scalar_lea.vmem %s17_s13, 256  ;;  %p220_p4 = scmp.lt.s32.totalorder %s17_s13, %s17_s13 }
   0xa   :  { %p216_p3 = scmp.ne.s32.totalorder %s17_s13, %s215_s21  ;;  %p221_p5 = scmp.lt.s32.totalorder %s215_s21, %s215_s21 }
   0xc   :  { %p222_p6 = por %p221_p5, %p220_p4 }
   0xe   :  { %p223_p7 = pnand %p222_p6, %p216_p3 }
  0x10   :  { %226 = shalt.err (!%p223_p7)
}
  0x11   :  { %s278_s22 = smov 128   ;;  %s279_s23 = smov 8  }
  0x12   :  { %22 = dma.hbm_to_vmem [thread:$0]  %s347_s0, 256, %s17_s13, [#allocation3], %s278_s22, %s278_s22, %s279_s23  }
  0x13   :  { %s280_s26 = smov [#allocation5]   ;;  %s227_s30 = scalar_lea.hbm %s348_s1, 512 }
  0x14   :  { %s28_s27 = sshll.u32 %s280_s26, 4  ;;  %p228_p8 = scmp.ne.s32.totalorder %s348_s1, %s227_s30  ;;  %s29_s27 = int_to_ptr.vmem [resolvable:$true] %s28_s27 }
  0x15   :  { %p231_p9 = scmp.lt.u32.totalorder %s227_s30, %s348_s1 }
  0x17   :  { %p233_p10 = pnand %p231_p9, %p228_p8 }
  0x19   :  { %236 = shalt.err (!%p233_p10)
}
  0x1a   :  { %s237_s8 = scalar_lea.vmem %s29_s27, 512  ;;  %p242_p12 = scmp.lt.s32.totalorder %s29_s27, %s29_s27 }
  0x1b   :  { %p238_p11 = scmp.ne.s32.totalorder %s29_s27, %s237_s8  ;;  %p243_p13 = scmp.lt.s32.totalorder %s237_s8, %s237_s8 }
  0x1d   :  { %p244_p0 = por %p243_p13, %p242_p12 }
  0x1f   :  { %p245_p1 = pnand %p244_p0, %p238_p11 }
  0x21   :  { %248 = shalt.err (!%p245_p1)
}
  0x22   :  { %34 = dma.hbm_to_vmem [thread:$0]  %s348_s1, 512, %s29_s27, [#allocation6], %s278_s22, %s278_s22, %s279_s23  }
  0x23   :  { %271 = dma.done.wait [#allocation3], 256  }
  0x24   :  { %272 = vsyncadd [#allocation3], 4294967040 }
  0x25   :  { %273 = dma.done.wait [#allocation6], 512  }
  0x26   :  { %274 = vsyncadd [#allocation6], 4294966784  ;;  %v281_v0 = vmov 0.0|0.0   ;;  %vm282_vm0 = vmmov 0   ;;  %v283_v1 = vmov 0.0   ;;  %vm61_vm1 = vcmask 261120  }
  0x27   :  { %187 = vmatprep.subr.bf16.mxu0 %v281_v0  ;;  %184 = vmatprep.mubr.msk.f32.mxu0 %vm282_vm0, %v283_v1  ;;  %v45_v2 = vld [vmem:[#allocation5] sm:$0xff]  ;;  %v46_v3 = vld [vmem:[#allocation5 + $0x8] sm:$0xff]  ;;  %vm189_vm2 = vmpackc.low %vm61_vm1, %vm61_vm1  ;;  %vm59_vm3 = vcmask 1041409   ;;  %s284_s11 = smov [#allocation7]   ;;  %vm147_vm4 = vcmask 254976  }
  0x28   :  { %v188_v4 = vpack.c.bf16 %v46_v3, %v45_v2  ;;  %v47_v5 = vld [vmem:[#allocation5 + $0x10] sm:$0xff]  ;;  %v48_v6 = vld [vmem:[#allocation5 + $0x18] sm:$0xff]  ;;  %s155_s12 = sshll.u32 %s284_s11, 4  ;;  %s156_s12 = int_to_ptr.vmem [resolvable:$true] %s155_s12 }
  0x29   :  { %v192_v7 = vpack.c.bf16 %v48_v6, %v47_v5  ;;  %v44_v8 = vld [vmem:[#allocation2 + $0xb] sm:$0x1]  ;;  %v43_v10 = vld [vmem:[#allocation2 + $0x3] sm:$0x1]  ;;  %v165_v12 = vld [vmem:[%s349_s2] ss:$0 sm:$0xff]  ;;  %p254_p3 = scmp.lt.s32.totalorder %s156_s12, %s156_s12 }
  0x2a   :  { %190 = vmatpush3.bf16.xpose.msk.msra.mxu0 %vm189_vm2, %v188_v4  ;;  %v58_v9 = vrot.slane %v44_v8, 7  ;;  %s249_s13 = scalar_lea.vmem %s156_s12, 32 }
  0x2b   :  { %191 = vmatprep.subr.bf16.mxu0 %v281_v0  ;;  %p250_p2 = scmp.ne.s32.totalorder %s156_s12, %s249_s13  ;;  %p255_p4 = scmp.lt.s32.totalorder %s249_s13, %s249_s13 }
  0x2c   :  { %v60_v11 = vsel %vm59_vm3, %v58_v9, %v43_v10 }
  0x2d   :  { %p256_p5 = por %p255_p4, %p254_p3 }
  0x2f   :  { %p257_p6 = pnand %p256_p5, %p250_p2 }
  0x32   :  { %194 = vmatpush3.bf16.xpose.msk.msra.mxu0 %vm189_vm2, %v192_v7 }
  0x39   :  { %185 = vmatmul.mubr.msk.f32.vlgmr.msra.gmra.mrb[0].mxu0 %vm61_vm1, %v60_v11 }
 0x10c   :  { %v142_v13 = vpop.f32.mrb[0].mxu0 }
 0x10d   :  { %v143_v14 = vadd.f32 %v165_v12, %v142_v13  ;;  %v186_v15 = vpop.f32.mrb[1].mxu0 }
 0x10f   :  { %203 = vtanh.f32 %v143_v14 }
 0x119   :  { %v204_v16 = vpop.eup %203 }
 0x11a   :  { %148 = vst.msk [vmem:[#allocation7] sm:$0x3] %vm147_vm4, %v204_v16 }
 0x11b   :  { %260 = shalt.err (!%p257_p6)
}
 0x11c   :  { %s261_s2 = scalar_lea.hbm %s350_s3, 32 }
 0x11d   :  { %p262_p7 = scmp.ne.s32.totalorder %s350_s3, %s261_s2  ;;  %p265_p8 = scmp.lt.u32.totalorder %s261_s2, %s350_s3 }
 0x11f   :  { %p267_p9 = pnand %p265_p8, %p262_p7 }
 0x121   :  { %270 = shalt.err (!%p267_p9)
}
 0x122   :  { %158 = dma.vmem_to_hbm [thread:$0]  %s156_s12, 32, %s350_s3, [#allocation4]  }
 0x123   :  { %275 = dma.done.wait [#allocation4], 32  }
 0x124   :  { %276 = vsyncadd [#allocation4], 4294967264 }
 0x125   :  { %162 = vsyncpa [#allocation3], 1 }
 0x126   :  { %163 = vsyncpa [#allocation6], 1 }
 0x127   :  { %164 = vsyncpa [#allocation4], 1 }

</bundles_post_ra>
